<compile_context>
chip_gen: v5e
topology: v5e:2x2
jax: 0.10.0
libtpu: 0.0.40
codegen_flags: <defaults>
</compile_context>

<pallas_src>
import functools

import jax
import jax.numpy as jnp
from jax import lax
from jax.experimental import pallas as pl
from jax.experimental.pallas import tpu as pltpu


def _qnet_kernel(x_ref, w1_ref, b1_ref, w2_ref, b2_ref, o_ref, *, matmul_dtype):
    x = x_ref[...]
    w1 = w1_ref[...]
    w2 = w2_ref[...]
    if matmul_dtype is not None:
        x = x.astype(matmul_dtype)
        w1 = w1.astype(matmul_dtype)
        w2 = w2.astype(matmul_dtype)

    # hidden = relu(x @ W1.T + b1): contract x dim 1 with w1 dim 1 (native
    # PyTorch (out, in) layout, no transpose / materialized copy needed).
    h = lax.dot_general(
        x, w1,
        dimension_numbers=(((1,), (1,)), ((), ())),
        preferred_element_type=jnp.float32,
    )
    h = jnp.maximum(h + b1_ref[...], 0.0)  # bias + ReLU always in f32

    if matmul_dtype is not None:
        h = h.astype(matmul_dtype)

    # out = hidden @ W2.T + b2
    o = lax.dot_general(
        h, w2,
        dimension_numbers=(((1,), (1,)), ((), ())),
        preferred_element_type=jnp.float32,
    )
    o_ref[...] = (o + b2_ref[...]).astype(o_ref.dtype)


def _round_up(n, m):
    return (n + m - 1) // m * m


@functools.partial(jax.jit, static_argnames=("matmul_dtype", "tile_b_max"))
def linear_qnet_forward(x, w1, b1, w2, b2, *, matmul_dtype=None, tile_b_max=512):
    """Forward pass of Linear_QNet.

    x : (B, input_size)      float32
    w1: (hidden, input_size) float32  (native PyTorch nn.Linear layout)
    b1: (hidden,)            float32
    w2: (output, hidden)     float32
    b2: (output,)            float32
    matmul_dtype: None (exact f32) or jnp.bfloat16 (MXU-native on v6e/v7x,
                  f32 accumulation).
    returns (B, output) float32
    """
    B, in_size = x.shape
    hidden = w1.shape[0]
    out_size = w2.shape[0]

    # Batch tiling: single tile for small batches, fixed tile (with zero
    # padding of the ragged tail) for large ones. Tile rows are a multiple of
    # 8 to satisfy the (8, 128) sublane constraint.
    b_pad = _round_up(B, 8)
    if b_pad <= tile_b_max:
        tile_b = b_pad
    else:
        tile_b = tile_b_max
        b_pad = _round_up(B, tile_b)

    if b_pad != B:
        x = jnp.pad(x, ((0, b_pad - B), (0, 0)))

    # Biases as (1, N) for in-kernel broadcast over the batch tile.
    b1_2d = b1.reshape(1, hidden)
    b2_2d = b2.reshape(1, out_size)

    grid = (b_pad // tile_b,)
    kernel = functools.partial(_qnet_kernel, matmul_dtype=matmul_dtype)

    out = pl.pallas_call(
        kernel,
        out_shape=jax.ShapeDtypeStruct((b_pad, out_size), x.dtype),
        grid_spec=pltpu.PrefetchScalarGridSpec(
            num_scalar_prefetch=0,
            grid=grid,
            in_specs=[
                pl.BlockSpec((tile_b, in_size), lambda i: (i, 0)),    # x (batch-tiled)
                pl.BlockSpec((hidden, in_size), lambda i: (0, 0)),    # w1 (resident)
                pl.BlockSpec((1, hidden), lambda i: (0, 0)),          # b1 (resident)
                pl.BlockSpec((out_size, hidden), lambda i: (0, 0)),   # w2 (resident)
                pl.BlockSpec((1, out_size), lambda i: (0, 0)),        # b2 (resident)
            ],
            out_specs=pl.BlockSpec((tile_b, out_size), lambda i: (i, 0)),
        ),
        compiler_params=pltpu.CompilerParams(
            dimension_semantics=("parallel",),   # megacore sharding on v7x
        ),
    )(x, w1, b1_2d, w2, b2_2d)

    if b_pad != B:
        out = out[:B]
    return out


def init_params(key, input_size, hidden_size, output_size):
    """Deterministic init mimicking nn.Linear's U(-1/sqrt(fan_in), 1/sqrt(fan_in))."""
    k1, k2, k3, k4 = jax.random.split(key, 4)
    bound1 = 1.0 / (input_size ** 0.5)
    bound2 = 1.0 / (hidden_size ** 0.5)
    w1 = jax.random.uniform(k1, (hidden_size, input_size), jnp.float32, -bound1, bound1)
    b1 = jax.random.uniform(k2, (hidden_size,), jnp.float32, -bound1, bound1)
    w2 = jax.random.uniform(k3, (output_size, hidden_size), jnp.float32, -bound2, bound2)
    b2 = jax.random.uniform(k4, (output_size,), jnp.float32, -bound2, bound2)
    return w1, b1, w2, b2


if __name__ == "__main__":
    INPUT, HIDDEN, OUTPUT = 16, 32, 4

    key = jax.random.PRNGKey(0)
    kx, kp, kx2 = jax.random.split(key, 3)
    w1, b1, w2, b2 = init_params(kp, INPUT, HIDDEN, OUTPUT)

    def ref_fwd(x):
        return jnp.maximum(x @ w1.T + b1, 0.0) @ w2.T + b2

    # 1) Small single-tile batch (typical single-step RL inference), exact f32 path.
    x_small = jax.random.normal(kx, (8, INPUT), dtype=jnp.float32)
    out_small = jax.block_until_ready(linear_qnet_forward(x_small, w1, b1, w2, b2))
    assert out_small.shape == (8, OUTPUT)
    assert jnp.allclose(out_small, ref_fwd(x_small), atol=1e-5, rtol=1e-5)

    # 2) Larger ragged batch exercising the batch grid + zero-pad/slice path.
    x_big = jax.random.normal(kx2, (1000, INPUT), dtype=jnp.float32)
    out_big = jax.block_until_ready(linear_qnet_forward(x_big, w1, b1, w2, b2))
    assert out_big.shape == (1000, OUTPUT)
    assert jnp.allclose(out_big, ref_fwd(x_big), atol=1e-5, rtol=1e-5)

    # 3) bf16-matmul fast path (v6e/v7x MXU-native), f32 accumulation + f32 bias/ReLU.
    out_bf16 = jax.block_until_ready(
        linear_qnet_forward(x_big, w1, b1, w2, b2, matmul_dtype=jnp.bfloat16))
    assert jnp.allclose(out_bf16, ref_fwd(x_big), atol=5e-2, rtol=5e-2)

    print("KERNEL_OK")
</pallas_src>

<mosaic_0001>
module attributes {stable_mosaic.version = 11 : i64} {
  func.func @_qnet_kernel(%arg0: i32, %arg1: memref<8x16xf32, #tpu.memory_space<vmem>>, %arg2: memref<32x16xf32, #tpu.memory_space<vmem>>, %arg3: memref<1x32xf32, #tpu.memory_space<vmem>>, %arg4: memref<4x32xf32, #tpu.memory_space<vmem>>, %arg5: memref<1x4xf32, #tpu.memory_space<vmem>>, %arg6: memref<8x4xf32, #tpu.memory_space<vmem>>) attributes {dimension_semantics = [#tpu.dimension_semantics<parallel>], iteration_bounds = array<i64: 1>, scalar_prefetch = 0 : i64, scratch_operands = 0 : i64, tpu.core_type = #tpu.core_type<tc>, window_params = [{transform_indices = @transform_0, window_bounds = array<i64: 8, 16>}, {pipeline_mode = #tpu.pipeline_mode<synchronous>, transform_indices = @transform_1, window_bounds = array<i64: 32, 16>}, {pipeline_mode = #tpu.pipeline_mode<synchronous>, transform_indices = @transform_2, window_bounds = array<i64: 1, 32>}, {pipeline_mode = #tpu.pipeline_mode<synchronous>, transform_indices = @transform_3, window_bounds = array<i64: 4, 32>}, {pipeline_mode = #tpu.pipeline_mode<synchronous>, transform_indices = @transform_4, window_bounds = array<i64: 1, 4>}, {transform_indices = @transform_5, window_bounds = array<i64: 8, 4>}]} {
    %c0 = arith.constant 0 : index
    %c0_0 = arith.constant 0 : index
    %0 = vector.load %arg1[%c0, %c0_0] : memref<8x16xf32, #tpu.memory_space<vmem>>, vector<8x16xf32>
    %c0_1 = arith.constant 0 : index
    %c0_2 = arith.constant 0 : index
    %1 = vector.load %arg2[%c0_1, %c0_2] : memref<32x16xf32, #tpu.memory_space<vmem>>, vector<32x16xf32>
    %c0_3 = arith.constant 0 : index
    %c0_4 = arith.constant 0 : index
    %2 = vector.load %arg4[%c0_3, %c0_4] : memref<4x32xf32, #tpu.memory_space<vmem>>, vector<4x32xf32>
    %cst = arith.constant dense<0.000000e+00> : vector<8x32xf32>
    %3 = tpu.matmul %0, %1, %cst {dimension_numbers = #tpu.dot_dimension_numbers<[1], [1], [0], [0], [0, 0, 1, 0], [], []>} : vector<8x16xf32>, vector<32x16xf32>, vector<8x32xf32> -> vector<8x32xf32>
    %c0_5 = arith.constant 0 : index
    %c0_6 = arith.constant 0 : index
    %4 = vector.load %arg3[%c0_5, %c0_6] : memref<1x32xf32, #tpu.memory_space<vmem>>, vector<1x32xf32>
    %5 = vector.broadcast %4 : vector<1x32xf32> to vector<8x32xf32>
    %6 = arith.addf %3, %5 : vector<8x32xf32>
    %cst_7 = arith.constant 0.000000e+00 : f32
    %7 = vector.broadcast %cst_7 : f32 to vector<8x32xf32>
    %8 = arith.maximumf %6, %7 : vector<8x32xf32>
    %cst_8 = arith.constant dense<0.000000e+00> : vector<8x4xf32>
    %9 = tpu.matmul %8, %2, %cst_8 {dimension_numbers = #tpu.dot_dimension_numbers<[1], [1], [0], [0], [0, 0, 1, 0], [], []>} : vector<8x32xf32>, vector<4x32xf32>, vector<8x4xf32> -> vector<8x4xf32>
    %c0_9 = arith.constant 0 : index
    %c0_10 = arith.constant 0 : index
    %10 = vector.load %arg5[%c0_9, %c0_10] : memref<1x4xf32, #tpu.memory_space<vmem>>, vector<1x4xf32>
    %11 = vector.broadcast %10 : vector<1x4xf32> to vector<8x4xf32>
    %12 = arith.addf %9, %11 : vector<8x4xf32>
    %c0_11 = arith.constant 0 : index
    %c0_12 = arith.constant 0 : index
    %13 = vector.load %arg6[%c0_11, %c0_12] : memref<8x4xf32, #tpu.memory_space<vmem>>, vector<8x4xf32>
    tpu.vector_store %arg6[%c0_11, %c0_12], %12 {strides = array<i32>} : memref<8x4xf32, #tpu.memory_space<vmem>>, vector<8x4xf32>,
    return
  }
  func.func @transform_0(%arg0: i32) -> (i32, i32) {
    %c0_i32 = arith.constant 0 : i32
    %c0_i32_0 = arith.constant 0 : i32
    return %arg0, %c0_i32 : i32, i32
  }
  func.func @transform_1(%arg0: i32) -> (i32, i32) {
    %c0_i32 = arith.constant 0 : i32
    %c0_i32_0 = arith.constant 0 : i32
    %c0_i32_1 = arith.constant 0 : i32
    return %c0_i32, %c0_i32_0 : i32, i32
  }
  func.func @transform_2(%arg0: i32) -> (i32, i32) {
    %c0_i32 = arith.constant 0 : i32
    %c0_i32_0 = arith.constant 0 : i32
    %c0_i32_1 = arith.constant 0 : i32
    return %c0_i32, %c0_i32_0 : i32, i32
  }
  func.func @transform_3(%arg0: i32) -> (i32, i32) {
    %c0_i32 = arith.constant 0 : i32
    %c0_i32_0 = arith.constant 0 : i32
    %c0_i32_1 = arith.constant 0 : i32
    return %c0_i32, %c0_i32_0 : i32, i32
  }
  func.func @transform_4(%arg0: i32) -> (i32, i32) {
    %c0_i32 = arith.constant 0 : i32
    %c0_i32_0 = arith.constant 0 : i32
    %c0_i32_1 = arith.constant 0 : i32
    return %c0_i32, %c0_i32_0 : i32, i32
  }
  func.func @transform_5(%arg0: i32) -> (i32, i32) {
    %c0_i32 = arith.constant 0 : i32
    %c0_i32_0 = arith.constant 0 : i32
    return %arg0, %c0_i32 : i32, i32
  }
}

</mosaic_0001>

<bundles_post_ra>
// kernel: linear_qnet_forward.1
= control target key start
LH: loop header
LB: loop body
LE: loop exit
PB: predicated region body
PF: predicated region fallthrough
CT: control target
= control target key end

     0   :  { %vm30_vm0 = vcmask 130048   ;;  %vm71_vm1 = vcmask 261120   ;;  %vm98_vm2 = vcmask 31744   ;;  %s170_s1 = inlined_call_operand.vmem [shape: f32[32,16], index: 1, kind: input, shape index: {}]   ;;  %s171_s2 = inlined_call_operand.vmem [shape: f32[1,32], index: 2, kind: input, shape index: {}]   ;;  %s172_s0 = inlined_call_operand.vmem [shape: f32[8,16], index: 0, kind: input, shape index: {}]   ;;  %s173_s4 = inlined_call_operand.vmem [shape: f32[1,4], index: 4, kind: input, shape index: {}]   ;;  %s174_s3 = inlined_call_operand.vmem [shape: f32[4,32], index: 3, kind: input, shape index: {}]   ;;  %s175_s5 = inlined_call_operand.vmem [shape: f32[8,4], index: 5, kind: output, shape index: {}]  }
   0x1   :  { %v24_v0 = vld [vmem:[%s170_s1 + $0x18] sm:$0xff]  ;;  %v23_v1 = vld [vmem:[%s170_s1 + $0x10] sm:$0xff]  ;;  %v22_v2 = vld [vmem:[%s170_s1 + $0x8] sm:$0xff] }
   0x2   :  { %104 = vmatpush.xpose.msk.msra.mxu0 %vm30_vm0, %v24_v0  ;;  %v21_v3 = vld [vmem:[%s170_s1] sm:$0xff] }
   0x3   :  { %v20_v4 = vld [vmem:[%s172_s0] sm:$0xff] }
   0x4   :  { %v25_v5 = vld [vmem:[%s174_s3] sm:$0xf] }
   0x5   :  { %109 = vmatpush.xpose.msk.msra.mxu1 %vm71_vm1, %v25_v5  ;;  %v111_v6 = vld [vmem:[%s171_s2] ss:$0 sm:$0xff] }
   0x6   :  { %105 = vmatpush.xpose.msk.msra.mxu0 %vm30_vm0, %v23_v1  ;;  %v112_v10 = vld [vmem:[%s173_s4] ss:$0 sm:$0xff] }
   0xa   :  { %106 = vmatpush.xpose.msk.msra.mxu0 %vm30_vm0, %v22_v2 }
   0xe   :  { %107 = vmatpush.xpose.msk.msra.mxu0 %vm30_vm0, %v21_v3 }
  0x11   :  { %108 = vmatmul.msk.f32.vlgmr.msra.gmra.mxu0 %vm30_vm0, %v20_v4 }
  0x8e   :  { %v63_v7 = vpop.f32.mrf.mxu0 }
  0x8f   :  { %v64_v8 = vadd.f32 %v111_v6, %v63_v7 }
  0x91   :  { %v66_v9 = vmax.f32 %v64_v8, 0.0 }
  0x93   :  { %110 = vmatmul.msk.f32.vlgmr.msra.gmra.mxu1 %vm71_vm1, %v66_v9 }
 0x110   :  { %v95_v11 = vpop.f32.mrf.mxu1 }
 0x111   :  { %v96_v12 = vadd.f32 %v112_v10, %v95_v11 }
 0x113   :  { %99 = vst.msk [vmem:[%s175_s5] sm:$0xff] %vm98_vm2, %v96_v12 }

</bundles_post_ra>
